<compile_context>
chip_gen: v7x
topology: tpu7x:2x2x1
jax: 0.10.0
libtpu: 0.0.40
codegen_flags: <defaults>
</compile_context>

<pallas_src>
import jax
import jax.numpy as jnp
from jax.experimental import pallas as pl
from jax.experimental.pallas import tpu as pltpu

_OUT_LANES = 128  # lane-dense output slab: q1 -> col 0, q2 -> col 1, rest zero


def _critic_kernel(s_ref, a_ref, w1s_ref, w1a_ref, b1_ref,
                   w2_ref, b2_ref, w3_ref, b3_ref, q_ref):
    # Layer 1: x @ W1 realized as state @ W1[:S] + action @ W1[S:] (concat done on MXU,
    # no materialized x in HBM). Both heads computed at once (2H-wide hidden).
    h = (jnp.dot(s_ref[...], w1s_ref[...], preferred_element_type=jnp.float32)
         + jnp.dot(a_ref[...], w1a_ref[...], preferred_element_type=jnp.float32)
         + b1_ref[...])
    h = jnp.maximum(h, 0.0)
    # Layer 2: block-diagonal W2 keeps the two heads independent.
    h = jnp.dot(h, w2_ref[...], preferred_element_type=jnp.float32) + b2_ref[...]
    h = jnp.maximum(h, 0.0)
    # Layer 3: W3 packed into a 128-lane slab -> unmasked, lane-dense store.
    q = jnp.dot(h, w3_ref[...], preferred_element_type=jnp.float32) + b3_ref[...]
    q_ref[...] = q.astype(q_ref.dtype)


def _round_up(n, m):
    return ((n + m - 1) // m) * m


def init_params(key, state_dim, action_dim, hidden_dim):
    """Per-head parameters, PyTorch-like uniform fan-in init. Weights are (in, out)."""
    in_dim = state_dim + action_dim
    dims = [(in_dim, hidden_dim), (hidden_dim, hidden_dim), (hidden_dim, 1)]
    names = [("w1", "b1"), ("w2", "b2"), ("w3", "b3")]
    params = {}
    for head in ("a", "b"):
        for (din, dout), (wn, bn) in zip(dims, names):
            key, kw, kb = jax.random.split(key, 3)
            bound = 1.0 / jnp.sqrt(jnp.float32(din))
            params[wn + head] = jax.random.uniform(kw, (din, dout), jnp.float32, -bound, bound)
            params[bn + head] = jax.random.uniform(kb, (1, dout), jnp.float32, -bound, bound)
    return params


def pack_params(params, state_dim):
    """Fuse the twin heads into one weight set usable by the fused kernel."""
    H = params["w1a"].shape[1]
    # Layer 1: concat heads along output dim, then split rows into state/action parts.
    w1 = jnp.concatenate([params["w1a"], params["w1b"]], axis=1)      # (in_dim, 2H)
    w1s = w1[:state_dim]                                              # (S, 2H)
    w1a = w1[state_dim:]                                              # (A, 2H)
    b1 = jnp.concatenate([params["b1a"], params["b1b"]], axis=1)      # (1, 2H)
    # Layer 2: block-diagonal so heads stay independent.
    w2 = jnp.zeros((2 * H, 2 * H), jnp.float32)
    w2 = w2.at[:H, :H].set(params["w2a"]).at[H:, H:].set(params["w2b"])
    b2 = jnp.concatenate([params["b2a"], params["b2b"]], axis=1)      # (1, 2H)
    # Layer 3: pack into a lane-dense 128-column slab (q1 -> col 0, q2 -> col 1).
    w3 = jnp.zeros((2 * H, _OUT_LANES), jnp.float32)
    w3 = w3.at[:H, 0:1].set(params["w3a"]).at[H:, 1:2].set(params["w3b"])
    b3 = jnp.zeros((1, _OUT_LANES), jnp.float32)
    b3 = b3.at[0, 0].set(params["b3a"][0, 0]).at[0, 1].set(params["b3b"][0, 0])
    return {"w1s": w1s, "w1a": w1a, "b1": b1, "w2": w2, "b2": b2, "w3": w3, "b3": b3}


def critic_forward(state, action, packed, *, batch_tile=512):
    """Pallas equivalent of CriticNetwork.forward(state, action) -> (q1, q2)."""
    B, S = state.shape
    A = action.shape[1]

    # Batch tile: multiple of 8, capped (sized conservatively for v7x's smaller VMEM).
    TB = min(batch_tile, _round_up(B, 8))
    Bp = _round_up(B, TB)
    if Bp != B:
        pad = Bp - B
        state = jnp.pad(state, ((0, pad), (0, 0)))
        action = jnp.pad(action, ((0, pad), (0, 0)))

    grid = (Bp // TB,)

    in_specs = [
        pl.BlockSpec((TB, S), lambda i: (i, 0)),                       # state tile
        pl.BlockSpec((TB, A), lambda i: (i, 0)),                       # action tile
        pl.BlockSpec(packed["w1s"].shape, lambda i: (0, 0)),           # weights stay
        pl.BlockSpec(packed["w1a"].shape, lambda i: (0, 0)),           # VMEM-resident
        pl.BlockSpec(packed["b1"].shape, lambda i: (0, 0)),            # across batch
        pl.BlockSpec(packed["w2"].shape, lambda i: (0, 0)),            # iterations
        pl.BlockSpec(packed["b2"].shape, lambda i: (0, 0)),
        pl.BlockSpec(packed["w3"].shape, lambda i: (0, 0)),
        pl.BlockSpec(packed["b3"].shape, lambda i: (0, 0)),
    ]
    out_specs = pl.BlockSpec((TB, _OUT_LANES), lambda i: (i, 0))

    q = pl.pallas_call(
        _critic_kernel,
        out_shape=jax.ShapeDtypeStruct((Bp, _OUT_LANES), jnp.float32),
        grid=grid,
        in_specs=in_specs,
        out_specs=out_specs,
        compiler_params=pltpu.CompilerParams(
            dimension_semantics=("parallel",),   # shards batch tiles across TCs on v7x
        ),
    )(state, action,
      packed["w1s"], packed["w1a"], packed["b1"],
      packed["w2"], packed["b2"], packed["w3"], packed["b3"])

    return q[:B, 0:1], q[:B, 1:2]


if __name__ == "__main__":
    key = jax.random.PRNGKey(0)
    B, state_dim, action_dim, hidden_dim = 8, 12, 4, 32

    kp, ks, ka = jax.random.split(key, 3)
    params = init_params(kp, state_dim, action_dim, hidden_dim)
    packed = pack_params(params, state_dim)
    state = jax.random.normal(ks, (B, state_dim), jnp.float32)
    action = jax.random.normal(ka, (B, action_dim), jnp.float32)

    q1, q2 = critic_forward(state, action, packed)
    jax.block_until_ready((q1, q2))

    # Pure-JAX reference of the original (unfused) twin-MLP semantics.
    def ref_head(x, w1, b1, w2, b2, w3, b3):
        h = jnp.maximum(x @ w1 + b1, 0.0)
        h = jnp.maximum(h @ w2 + b2, 0.0)
        return h @ w3 + b3

    x = jnp.concatenate([state, action], axis=-1)
    r1 = ref_head(x, params["w1a"], params["b1a"], params["w2a"],
                  params["b2a"], params["w3a"], params["b3a"])
    r2 = ref_head(x, params["w1b"], params["b1b"], params["w2b"],
                  params["b2b"], params["w3b"], params["b3b"])
    assert q1.shape == (B, 1) and q2.shape == (B, 1)
    assert jnp.allclose(q1, r1, atol=1e-5) and jnp.allclose(q2, r2, atol=1e-5)

    print("KERNEL_OK")
</pallas_src>

<mosaic_0001>
module attributes {stable_mosaic.version = 11 : i64} {
  func.func @_critic_kernel(%arg0: i32, %arg1: memref<8x12xf32, #tpu.memory_space<vmem>>, %arg2: memref<8x4xf32, #tpu.memory_space<vmem>>, %arg3: memref<12x64xf32, #tpu.memory_space<vmem>>, %arg4: memref<4x64xf32, #tpu.memory_space<vmem>>, %arg5: memref<1x64xf32, #tpu.memory_space<vmem>>, %arg6: memref<64x64xf32, #tpu.memory_space<vmem>>, %arg7: memref<1x64xf32, #tpu.memory_space<vmem>>, %arg8: memref<64x128xf32, #tpu.memory_space<vmem>>, %arg9: memref<1x128xf32, #tpu.memory_space<vmem>>, %arg10: memref<8x128xf32, #tpu.memory_space<vmem>>) attributes {dimension_semantics = [#tpu.dimension_semantics<parallel>], iteration_bounds = array<i64: 1>, scalar_prefetch = 0 : i64, scratch_operands = 0 : i64, tpu.core_type = #tpu.core_type<tc>, window_params = [{transform_indices = @transform_0, window_bounds = array<i64: 8, 12>}, {transform_indices = @transform_1, window_bounds = array<i64: 8, 4>}, {pipeline_mode = #tpu.pipeline_mode<synchronous>, transform_indices = @transform_2, window_bounds = array<i64: 12, 64>}, {pipeline_mode = #tpu.pipeline_mode<synchronous>, transform_indices = @transform_3, window_bounds = array<i64: 4, 64>}, {pipeline_mode = #tpu.pipeline_mode<synchronous>, transform_indices = @transform_4, window_bounds = array<i64: 1, 64>}, {pipeline_mode = #tpu.pipeline_mode<synchronous>, transform_indices = @transform_5, window_bounds = array<i64: 64, 64>}, {pipeline_mode = #tpu.pipeline_mode<synchronous>, transform_indices = @transform_6, window_bounds = array<i64: 1, 64>}, {pipeline_mode = #tpu.pipeline_mode<synchronous>, transform_indices = @transform_7, window_bounds = array<i64: 64, 128>}, {pipeline_mode = #tpu.pipeline_mode<synchronous>, transform_indices = @transform_8, window_bounds = array<i64: 1, 128>}, {transform_indices = @transform_9, window_bounds = array<i64: 8, 128>}]} {
    %c0 = arith.constant 0 : index
    %c0_0 = arith.constant 0 : index
    %0 = vector.load %arg1[%c0, %c0_0] : memref<8x12xf32, #tpu.memory_space<vmem>>, vector<8x12xf32>
    %c0_1 = arith.constant 0 : index
    %c0_2 = arith.constant 0 : index
    %1 = vector.load %arg3[%c0_1, %c0_2] : memref<12x64xf32, #tpu.memory_space<vmem>>, vector<12x64xf32>
    %cst = arith.constant dense<0.000000e+00> : vector<8x64xf32>
    %2 = tpu.matmul %0, %1, %cst {dimension_numbers = #tpu.dot_dimension_numbers<[1], [0], [0], [1], [0, 0, 1, 1], [], []>} : vector<8x12xf32>, vector<12x64xf32>, vector<8x64xf32> -> vector<8x64xf32>
    %c0_3 = arith.constant 0 : index
    %c0_4 = arith.constant 0 : index
    %3 = vector.load %arg2[%c0_3, %c0_4] : memref<8x4xf32, #tpu.memory_space<vmem>>, vector<8x4xf32>
    %c0_5 = arith.constant 0 : index
    %c0_6 = arith.constant 0 : index
    %4 = vector.load %arg4[%c0_5, %c0_6] : memref<4x64xf32, #tpu.memory_space<vmem>>, vector<4x64xf32>
    %cst_7 = arith.constant dense<0.000000e+00> : vector<8x64xf32>
    %5 = tpu.matmul %3, %4, %cst_7 {dimension_numbers = #tpu.dot_dimension_numbers<[1], [0], [0], [1], [0, 0, 1, 1], [], []>} : vector<8x4xf32>, vector<4x64xf32>, vector<8x64xf32> -> vector<8x64xf32>
    %6 = arith.addf %2, %5 : vector<8x64xf32>
    %c0_8 = arith.constant 0 : index
    %c0_9 = arith.constant 0 : index
    %7 = vector.load %arg5[%c0_8, %c0_9] : memref<1x64xf32, #tpu.memory_space<vmem>>, vector<1x64xf32>
    %8 = vector.broadcast %7 : vector<1x64xf32> to vector<8x64xf32>
    %9 = arith.addf %6, %8 : vector<8x64xf32>
    %cst_10 = arith.constant 0.000000e+00 : f32
    %10 = vector.broadcast %cst_10 : f32 to vector<8x64xf32>
    %11 = arith.maximumf %9, %10 : vector<8x64xf32>
    %c0_11 = arith.constant 0 : index
    %c0_12 = arith.constant 0 : index
    %12 = vector.load %arg6[%c0_11, %c0_12] : memref<64x64xf32, #tpu.memory_space<vmem>>, vector<64x64xf32>
    %cst_13 = arith.constant dense<0.000000e+00> : vector<8x64xf32>
    %13 = tpu.matmul %11, %12, %cst_13 {dimension_numbers = #tpu.dot_dimension_numbers<[1], [0], [0], [1], [0, 0, 1, 1], [], []>} : vector<8x64xf32>, vector<64x64xf32>, vector<8x64xf32> -> vector<8x64xf32>
    %c0_14 = arith.constant 0 : index
    %c0_15 = arith.constant 0 : index
    %14 = vector.load %arg7[%c0_14, %c0_15] : memref<1x64xf32, #tpu.memory_space<vmem>>, vector<1x64xf32>
    %15 = vector.broadcast %14 : vector<1x64xf32> to vector<8x64xf32>
    %16 = arith.addf %13, %15 : vector<8x64xf32>
    %cst_16 = arith.constant 0.000000e+00 : f32
    %17 = vector.broadcast %cst_16 : f32 to vector<8x64xf32>
    %18 = arith.maximumf %16, %17 : vector<8x64xf32>
    %c0_17 = arith.constant 0 : index
    %c0_18 = arith.constant 0 : index
    %19 = vector.load %arg8[%c0_17, %c0_18] : memref<64x128xf32, #tpu.memory_space<vmem>>, vector<64x128xf32>
    %cst_19 = arith.constant dense<0.000000e+00> : vector<8x128xf32>
    %20 = tpu.matmul %18, %19, %cst_19 {dimension_numbers = #tpu.dot_dimension_numbers<[1], [0], [0], [1], [0, 0, 1, 1], [], []>} : vector<8x64xf32>, vector<64x128xf32>, vector<8x128xf32> -> vector<8x128xf32>
    %c0_20 = arith.constant 0 : index
    %c0_21 = arith.constant 0 : index
    %21 = vector.load %arg9[%c0_20, %c0_21] : memref<1x128xf32, #tpu.memory_space<vmem>>, vector<1x128xf32>
    %22 = vector.broadcast %21 : vector<1x128xf32> to vector<8x128xf32>
    %23 = arith.addf %20, %22 : vector<8x128xf32>
    %c0_22 = arith.constant 0 : index
    %c0_23 = arith.constant 0 : index
    %24 = vector.load %arg10[%c0_22, %c0_23] : memref<8x128xf32, #tpu.memory_space<vmem>>, vector<8x128xf32>
    tpu.vector_store %arg10[%c0_22, %c0_23], %23 {strides = array<i32>} : memref<8x128xf32, #tpu.memory_space<vmem>>, vector<8x128xf32>,
    return
  }
  func.func @transform_0(%arg0: i32) -> (i32, i32) {
    %c0_i32 = arith.constant 0 : i32
    %c0_i32_0 = arith.constant 0 : i32
    return %arg0, %c0_i32 : i32, i32
  }
  func.func @transform_1(%arg0: i32) -> (i32, i32) {
    %c0_i32 = arith.constant 0 : i32
    %c0_i32_0 = arith.constant 0 : i32
    return %arg0, %c0_i32 : i32, i32
  }
  func.func @transform_2(%arg0: i32) -> (i32, i32) {
    %c0_i32 = arith.constant 0 : i32
    %c0_i32_0 = arith.constant 0 : i32
    %c0_i32_1 = arith.constant 0 : i32
    return %c0_i32, %c0_i32_0 : i32, i32
  }
  func.func @transform_3(%arg0: i32) -> (i32, i32) {
    %c0_i32 = arith.constant 0 : i32
    %c0_i32_0 = arith.constant 0 : i32
    %c0_i32_1 = arith.constant 0 : i32
    return %c0_i32, %c0_i32_0 : i32, i32
  }
  func.func @transform_4(%arg0: i32) -> (i32, i32) {
    %c0_i32 = arith.constant 0 : i32
    %c0_i32_0 = arith.constant 0 : i32
    %c0_i32_1 = arith.constant 0 : i32
    return %c0_i32, %c0_i32_0 : i32, i32
  }
  func.func @transform_5(%arg0: i32) -> (i32, i32) {
    %c0_i32 = arith.constant 0 : i32
    %c0_i32_0 = arith.constant 0 : i32
    %c0_i32_1 = arith.constant 0 : i32
    return %c0_i32, %c0_i32_0 : i32, i32
  }
  func.func @transform_6(%arg0: i32) -> (i32, i32) {
    %c0_i32 = arith.constant 0 : i32
    %c0_i32_0 = arith.constant 0 : i32
    %c0_i32_1 = arith.constant 0 : i32
    return %c0_i32, %c0_i32_0 : i32, i32
  }
  func.func @transform_7(%arg0: i32) -> (i32, i32) {
    %c0_i32 = arith.constant 0 : i32
    %c0_i32_0 = arith.constant 0 : i32
    %c0_i32_1 = arith.constant 0 : i32
    return %c0_i32, %c0_i32_0 : i32, i32
  }
  func.func @transform_8(%arg0: i32) -> (i32, i32) {
    %c0_i32 = arith.constant 0 : i32
    %c0_i32_0 = arith.constant 0 : i32
    %c0_i32_1 = arith.constant 0 : i32
    return %c0_i32, %c0_i32_0 : i32, i32
  }
  func.func @transform_9(%arg0: i32) -> (i32, i32) {
    %c0_i32 = arith.constant 0 : i32
    %c0_i32_0 = arith.constant 0 : i32
    return %arg0, %c0_i32 : i32, i32
  }
}

</mosaic_0001>

<bundles_post_ra>
// kernel: tpu_custom_call.1
= control target key start
LH: loop header
LB: loop body
LE: loop exit
PB: predicated region body
PF: predicated region fallthrough
CT: control target
= control target key end

     0   :  { %14 = vsyncpa [#allocation3], 0  ;;  %s789_s0 = inlined_call_operand.hbm [shape: f32[8,12], index: 0, kind: input, shape index: {}]   ;;  %s790_s1 = inlined_call_operand.vmem [shape: f32[8,4], index: 1, kind: input, shape index: {}]   ;;  %s791_s2 = inlined_call_operand.vmem [shape: f32[12,64], index: 2, kind: input, shape index: {}]   ;;  %s792_s3 = inlined_call_operand.vmem [shape: f32[4,64], index: 3, kind: input, shape index: {}]   ;;  %s793_s4 = inlined_call_operand.vmem [shape: f32[1,64], index: 4, kind: input, shape index: {}]   ;;  %s794_s5 = inlined_call_operand.hbm [shape: f32[64,64], index: 5, kind: input, shape index: {}]   ;;  %s795_s6 = inlined_call_operand.vmem [shape: f32[1,64], index: 6, kind: input, shape index: {}]   ;;  %s796_s7 = inlined_call_operand.hbm [shape: f32[64,128], index: 7, kind: input, shape index: {}]   ;;  %s797_s8 = inlined_call_operand.vmem [shape: f32[1,128], index: 8, kind: input, shape index: {}]   ;;  %s798_s9 = inlined_call_operand.hbm [shape: f32[8,128], index: 9, kind: output, shape index: {}]  }
   0x1   :  { %15 = vsyncpa [#allocation6], 0 }
   0x2   :  { %16 = vsyncpa [#allocation4], 0  ;;  %s650_s30 = smov [#allocation5]   ;;  %s556_s13 = scalar_lea.hbm %s794_s5, 1024 }
   0x3   :  { %s40_s10 = sshll.u32 %s650_s30, 4  ;;  %p557_p0 = scmp.ne.s32.totalorder %s794_s5, %s556_s13  ;;  %s41_s10 = int_to_ptr.vmem [resolvable:$true] %s40_s10 }
   0x4   :  { %p560_p1 = scmp.lt.u32.totalorder %s556_s13, %s794_s5 }
   0x6   :  { %p562_p2 = pnand %p560_p1, %p557_p0 }
   0x8   :  { %565 = shalt.err (!%p562_p2)
}
   0x9   :  { %s566_s18 = scalar_lea.vmem %s41_s10, 1024  ;;  %p571_p4 = scmp.lt.s32.totalorder %s41_s10, %s41_s10 }
   0xa   :  { %p567_p3 = scmp.ne.s32.totalorder %s41_s10, %s566_s18  ;;  %p572_p5 = scmp.lt.s32.totalorder %s566_s18, %s566_s18 }
   0xc   :  { %p573_p6 = por %p572_p5, %p571_p4 }
   0xe   :  { %p574_p7 = pnand %p573_p6, %p567_p3 }
  0x10   :  { %577 = shalt.err (!%p574_p7)
}
  0x11   :  { %s651_s19 = smov 128   ;;  %s652_s20 = smov 8  }
  0x12   :  { %46 = dma.hbm_to_vmem [thread:$0]  %s794_s5, 1024, %s41_s10, [#allocation6], %s651_s19, %s651_s19, %s652_s20  }
  0x13   :  { %s653_s23 = smov [#allocation2]   ;;  %s654_s25 = smov [#allocation7]  }
  0x14   :  { %s23_s24 = sshll.u32 %s653_s23, 4  ;;  %s54_s26 = sshll.u32 %s654_s25, 4  ;;  %s24_s24 = int_to_ptr.vmem [resolvable:$true] %s23_s24  ;;  %s55_s26 = int_to_ptr.vmem [resolvable:$true] %s54_s26 }
  0x15   :  { %s578_s29 = scalar_lea.hbm %s789_s0, 128 }
  0x16   :  { %p579_p8 = scmp.ne.s32.totalorder %s789_s0, %s578_s29  ;;  %p582_p9 = scmp.lt.u32.totalorder %s578_s29, %s789_s0 }
  0x18   :  { %p584_p10 = pnand %p582_p9, %p579_p8 }
  0x1a   :  { %587 = shalt.err (!%p584_p10)
}
  0x1b   :  { %s588_s5 = scalar_lea.vmem %s24_s24, 128  ;;  %p593_p12 = scmp.lt.s32.totalorder %s24_s24, %s24_s24 }
  0x1c   :  { %p589_p11 = scmp.ne.s32.totalorder %s24_s24, %s588_s5  ;;  %p594_p13 = scmp.lt.s32.totalorder %s588_s5, %s588_s5 }
  0x1e   :  { %p595_p0 = por %p594_p13, %p593_p12 }
  0x20   :  { %p596_p1 = pnand %p595_p0, %p589_p11 }
  0x22   :  { %599 = shalt.err (!%p596_p1)
}
  0x23   :  { %26 = dma.hbm_to_vmem [thread:$0]  %s789_s0, 128, %s24_s24, [#allocation3]  }
  0x24   :  { %s600_s17 = scalar_lea.hbm %s796_s7, 1024 }
  0x25   :  { %p601_p2 = scmp.ne.s32.totalorder %s796_s7, %s600_s17  ;;  %p604_p3 = scmp.lt.u32.totalorder %s600_s17, %s796_s7 }
  0x27   :  { %p606_p4 = pnand %p604_p3, %p601_p2 }
  0x29   :  { %609 = shalt.err (!%p606_p4)
}
  0x2a   :  { %s610_s25 = scalar_lea.vmem %s55_s26, 1024  ;;  %p615_p6 = scmp.lt.s32.totalorder %s55_s26, %s55_s26 }
  0x2b   :  { %p611_p5 = scmp.ne.s32.totalorder %s55_s26, %s610_s25  ;;  %p616_p7 = scmp.lt.s32.totalorder %s610_s25, %s610_s25 }
  0x2d   :  { %p617_p8 = por %p616_p7, %p615_p6 }
  0x2f   :  { %p618_p9 = pnand %p617_p8, %p611_p5 }
  0x31   :  { %621 = shalt.err (!%p618_p9)
}
  0x32   :  { %60 = dma.hbm_to_vmem [thread:$0]  %s796_s7, 1024, %s55_s26, [#allocation6], %s651_s19, %s651_s19, %s652_s20  }
  0x33   :  { %644 = dma.done.wait [#allocation3], 128  }
  0x34   :  { %645 = vsyncadd [#allocation3], 4294967168 }
  0x35   :  { %646 = dma.done.wait [#allocation6], 2048  }
  0x36   :  { %647 = vsyncadd [#allocation6], 4294965248  ;;  %v655_v0 = vmov 0.0|0.0   ;;  %v656_v1 = vmov 0.0   ;;  %vm657_vm0 = vmmov 0   ;;  %vm81_vm1 = vcmask 1043456  }
  0x37   :  { %518 = vmatprep.subr.bf16.mxu1 %v655_v0  ;;  %468 = vmatprep.subr.mxu0 %v656_v1  ;;  %vm658_vm2 = vmmov 1   ;;  %vm77_vm4 = vcmask 31744   ;;  %v73_v2 = vld [vmem:[%s791_s2] sm:$0xff]  ;;  %v74_v3 = vld [vmem:[%s791_s2 + $0x8] sm:$0xf]  ;;  %v242_v8 = vld [vmem:[#allocation5 + $0x8] sm:$0xff] }
  0x38   :  { %470 = vmatprep.mubr.msk.f32.mxu0 %vm657_vm0, %v656_v1  ;;  %477 = vmatprep.mubr.msk.f32.mxu1 %vm657_vm0, %v656_v1  ;;  %vm520_vm3 = vmpackc.low %vm81_vm1, %vm658_vm2  ;;  %v76_v4 = vld [vmem:[%s792_s3] sm:$0xf]  ;;  %v519_v5 = vpack.c.bf16 %v74_v3, %v73_v2  ;;  %v241_v7 = vld [vmem:[#allocation5] sm:$0xff]  ;;  %vm155_vm5 = vcmask 97280   ;;  %vm256_vm6 = vcmask 523264   ;;  %s659_s13 = smov [#allocation8]  }
  0x39   :  { %469 = vmatpush3.msk.msra.mxu0 %vm81_vm1, %v76_v4  ;;  %v75_v6 = vld [vmem:[%s790_s1] sm:$0xff]  ;;  %v243_v9 = vld [vmem:[#allocation5 + $0x10] sm:$0xff]  ;;  %v523_v12 = vpack.c.bf16 %v242_v8, %v241_v7  ;;  %v245_v14 = vld [vmem:[#allocation5 + $0x20] sm:$0xff]  ;;  %s426_s5 = sshll.u32 %s659_s13, 4  ;;  %s427_s5 = int_to_ptr.vmem [resolvable:$true] %s426_s5 }
  0x3a   :  { %471 = vmatmul.mubr.msk.f32.vlgmr.msra.gmra.mrb[0].mxu0 %vm77_vm4, %v75_v6  ;;  %522 = vmatprep.subr.bf16.mxu0 %v655_v0  ;;  %v244_v10 = vld [vmem:[#allocation5 + $0x18] sm:$0xff]  ;;  %v246_v15 = vld [vmem:[#allocation5 + $0x28] sm:$0xff]  ;;  %v247_v17 = vld [vmem:[#allocation5 + $0x30] sm:$0xff]  ;;  %s622_s10 = scalar_lea.vmem %s427_s5, 128  ;;  %p627_p11 = scmp.lt.s32.totalorder %s427_s5, %s427_s5 }
  0x3b   :  { %521 = vmatpush3.bf16.msk.msra.mxu1 %vm520_vm3, %v519_v5  ;;  %v72_v11 = vld [vmem:[#allocation2] sm:$0xff]  ;;  %496 = vmatprep.mubr.msk.f32.mxu0 %vm657_vm0, %v656_v1  ;;  %v526_v13 = vpack.c.bf16 %v244_v10, %v243_v9  ;;  %v529_v16 = vpack.c.bf16 %v246_v15, %v245_v14  ;;  %v331_v20 = vld [vmem:[#allocation7] sm:$0xff]  ;;  %v332_v21 = vld [vmem:[#allocation7 + $0x8] sm:$0xff]  ;;  %p623_p10 = scmp.ne.s32.totalorder %s427_s5, %s622_s10  ;;  %p628_p12 = scmp.lt.s32.totalorder %s622_s10, %s622_s10 }
  0x3c   :  { %534 = vmatprep.subr.bf16.mxu1 %v655_v0  ;;  %524 = vmatpush3.bf16.msra.mxu0 %v523_v12  ;;  %v248_v18 = vld [vmem:[#allocation5 + $0x38] sm:$0xff]  ;;  %v333_v22 = vld [vmem:[#allocation7 + $0x10] sm:$0xff]  ;;  %v535_v23 = vpack.c.bf16 %v332_v21, %v331_v20  ;;  %v335_v26 = vld [vmem:[#allocation7 + $0x20] sm:$0xff] }
  0x3d   :  { %525 = vmatprep.subr.bf16.mxu0 %v655_v0  ;;  %v532_v19 = vpack.c.bf16 %v248_v18, %v247_v17  ;;  %v334_v24 = vld [vmem:[#allocation7 + $0x18] sm:$0xff]  ;;  %v336_v27 = vld [vmem:[#allocation7 + $0x28] sm:$0xff]  ;;  %v337_v37 = vld [vmem:[#allocation7 + $0x30] sm:$0xff]  ;;  %p629_p13 = por %p628_p12, %p627_p11 }
  0x3e   :  { %478 = vmatmul.mubr.msk.f32.vlgmr.msra.gmra.mrb[0].mxu1 %vm155_vm5, %v72_v11  ;;  %v538_v25 = vpack.c.bf16 %v334_v24, %v333_v22  ;;  %v541_v28 = vpack.c.bf16 %v336_v27, %v335_v26  ;;  %v440_v32 = vld [vmem:[%s793_s4] ss:$0 sm:$0xff] }
  0x3f   :  { %515 = vmatprep.mubr.msk.f32.mxu1 %vm657_vm0, %v656_v1  ;;  %536 = vmatpush3.bf16.msra.mxu1 %v535_v23  ;;  %v338_v38 = vld [vmem:[#allocation7 + $0x38] sm:$0xff]  ;;  %p630_p0 = pnand %p629_p13, %p623_p10 }
  0x40   :  { %527 = vmatpush3.bf16.msra.mxu0 %v526_v13  ;;  %537 = vmatprep.subr.bf16.mxu1 %v655_v0  ;;  %v544_v39 = vpack.c.bf16 %v338_v38, %v337_v37  ;;  %v441_v40 = vld [vmem:[%s795_s6] ss:$0 sm:$0xff] }
  0x41   :  { %528 = vmatprep.subr.bf16.mxu0 %v655_v0  ;;  %v443_v45 = vld [vmem:[%s797_s8] ss:$0 sm:$0xff] }
  0x43   :  { %539 = vmatpush3.bf16.msra.mxu1 %v538_v25 }
  0x44   :  { %530 = vmatpush3.bf16.msra.mxu0 %v529_v16  ;;  %540 = vmatprep.subr.bf16.mxu1 %v655_v0 }
  0x45   :  { %531 = vmatprep.subr.bf16.mxu0 %v655_v0 }
  0x47   :  { %542 = vmatpush3.bf16.msra.mxu1 %v541_v28 }
  0x48   :  { %533 = vmatpush3.bf16.msra.mxu0 %v532_v19  ;;  %543 = vmatprep.subr.bf16.mxu1 %v655_v0 }
  0x4b   :  { %545 = vmatpush3.bf16.msra.mxu1 %v544_v39 }
 0x10d   :  { %v151_v29 = vpop.f32.mrb[0].mxu0 }
 0x10e   :  { %v472_v30 = vpop.f32.mrb[1].mxu0 }
 0x111   :  { %v228_v31 = vpop.f32.mrb[0].mxu1 }
 0x112   :  { %v229_v33 = vadd.f32 %v228_v31, %v151_v29  ;;  %v479_v34 = vpop.f32.mrb[1].mxu1 }
 0x114   :  { %v239_v35 = vadd.f32 %v440_v32, %v229_v33 }
 0x116   :  { %v240_v36 = vmax.f32 %v239_v35, 0.0 }
 0x118   :  { %497 = vmatmul.mubr.msk.f32.vlgmr.msra.gmra.mrb[2].mxu0 %vm256_vm6, %v240_v36 }
 0x1eb   :  { %v326_v41 = vpop.f32.mrb[2].mxu0 }
 0x1ec   :  { %v327_v42 = vadd.f32 %v441_v40, %v326_v41  ;;  %v498_v43 = vpop.f32.mrb[3].mxu0 }
 0x1ee   :  { %v330_v44 = vmax.f32 %v327_v42, 0.0 }
 0x1f0   :  { %516 = vmatmul.mubr.msk.f32.vlgmr.msra.gmra.mrb[2].mxu1 %vm256_vm6, %v330_v44 }
 0x2c3   :  { %v415_v46 = vpop.f32.mrb[2].mxu1 }
 0x2c4   :  { %v416_v47 = vadd.f32 %v443_v45, %v415_v46  ;;  %v517_v48 = vpop.f32.mrb[3].mxu1 }
 0x2c6   :  { %419 = vst [vmem:[#allocation8] sm:$0xff] %v416_v47 }
 0x2c7   :  { %633 = shalt.err (!%p630_p0)
}
 0x2c8   :  { %s634_s15 = scalar_lea.hbm %s798_s9, 128 }
 0x2c9   :  { %p635_p1 = scmp.ne.s32.totalorder %s798_s9, %s634_s15  ;;  %p638_p2 = scmp.lt.u32.totalorder %s634_s15, %s798_s9 }
 0x2cb   :  { %p640_p3 = pnand %p638_p2, %p635_p1 }
 0x2cd   :  { %643 = shalt.err (!%p640_p3)
}
 0x2ce   :  { %429 = dma.vmem_to_hbm [thread:$0]  %s427_s5, 128, %s798_s9, [#allocation4]  }
 0x2cf   :  { %648 = dma.done.wait [#allocation4], 128  }
 0x2d0   :  { %649 = vsyncadd [#allocation4], 4294967168 }
 0x2d1   :  { %433 = vsyncpa [#allocation3], 1 }
 0x2d2   :  { %434 = vsyncpa [#allocation6], 1 }
 0x2d3   :  { %435 = vsyncpa [#allocation4], 1 }

</bundles_post_ra>
